<compile_context>
chip_gen: v7x
topology: tpu7x:2x2x1
jax: 0.10.0
libtpu: 0.0.40
codegen_flags: <defaults>
</compile_context>

<pallas_src>
import functools

import jax
import jax.numpy as jnp
from jax.experimental import pallas as pl
from jax.experimental.pallas import tpu as pltpu


def _round_up(n, m):
    return ((n + m - 1) // m) * m


def _b_kernel(x_ref, w1t_ref, b1_ref, cat_ref, w2xt_ref, w2vt_ref, b2_ref, o_ref):
    x = x_ref[...]                               # [tm, H] f32 straight from HBM
    xb = x.astype(jnp.bfloat16)                  # in-kernel cast: no extra HBM pass

    # fc: logits = x @ W1^T + b1
    logits = jnp.dot(xb, w1t_ref[...], preferred_element_type=jnp.float32)
    logits = logits + b1_ref[...]                # [tm, C] f32 (bias kept f32)

    # numerically stable softmax; normalization deferred past the category matmul
    m = jnp.max(logits, axis=-1, keepdims=True)
    e = jnp.exp(logits - m)                      # [tm, C] f32
    denom = jnp.sum(e, axis=-1, keepdims=True)   # [tm, 1] f32

    # v = softmax(logits) @ categories == (e @ categories) * (1 / denom)
    v = jnp.dot(e.astype(jnp.bfloat16), cat_ref[...],
                preferred_element_type=jnp.float32)            # [tm, H] f32
    v = v * pl.reciprocal(denom, approx=True)    # EUP approx recip (2e-2 tol ok)

    # fc2 on concat(x, v) == x @ W2x^T + v @ W2v^T + b2   (concat-free)
    out = (jnp.dot(xb, w2xt_ref[...], preferred_element_type=jnp.float32)
           + jnp.dot(v.astype(jnp.bfloat16), w2vt_ref[...],
                     preferred_element_type=jnp.float32)
           + b2_ref[...])                        # [tm, H] f32
    o_ref[...] = out.astype(o_ref.dtype)


def prepare_params(params):
    """One-time weight prep (transpose / split / bf16 cast). Keep OUT of hot path."""
    H = params["fc_w"].shape[1]
    w2t = params["fc2_w"].T                                        # [2H, H]
    return dict(
        w1t=params["fc_w"].T.astype(jnp.bfloat16),                 # [H, C]
        b1=params["fc_b"].reshape(1, -1).astype(jnp.float32),      # [1, C]
        cat=params["categories"].astype(jnp.bfloat16),             # [C, H]
        w2xt=w2t[:H, :].astype(jnp.bfloat16),                      # [H, H]
        w2vt=w2t[H:, :].astype(jnp.bfloat16),                      # [H, H]
        b2=params["fc2_b"].reshape(1, -1).astype(jnp.float32),     # [1, H]
    )


def _row_tiling(batch, block_rows):
    """Return (tm, n_steps, padded_batch) with minimal remainder-tile waste.

    Small batches -> a single full-array tile (exempt from the 8-row rule, zero
    padding, zero wrapper passes). Large batches -> an even number of grid
    steps so the 'parallel' axis shards across both v7x TensorCores, with tm
    rounded to a multiple of 8 (f32 sublane) and padding minimized.
    """
    if batch < 128:
        return batch, 1, batch
    n_steps = max(2, pl.cdiv(batch, block_rows))
    if n_steps % 2:
        n_steps += 1
    tm = _round_up(pl.cdiv(batch, n_steps), 8)
    return tm, n_steps, tm * n_steps


@functools.partial(jax.jit, static_argnames=("block_rows",))
def b_forward(x, prepped, block_rows=1024):
    """x: [B, H] float32. prepped: output of prepare_params."""
    B, H = x.shape

    tm, n_steps, Bp = _row_tiling(B, block_rows)
    x_in = x if Bp == B else jnp.pad(x, ((0, Bp - B), (0, 0)))  # rows only, minimal

    def resident(arr):
        # constant index map -> DMA'd once, stays VMEM-resident across the grid
        return pl.BlockSpec(arr.shape, lambda i: (0, 0))

    out = pl.pallas_call(
        _b_kernel,
        out_shape=jax.ShapeDtypeStruct((Bp, H), jnp.float32),
        grid_spec=pl.GridSpec(
            grid=(n_steps,),
            in_specs=[
                pl.BlockSpec((tm, H), lambda i: (i, 0)),   # x: tiled over batch
                resident(prepped["w1t"]),                   # W1^T
                resident(prepped["b1"]),                    # b1
                resident(prepped["cat"]),                   # categories
                resident(prepped["w2xt"]),                  # W2^T x-half
                resident(prepped["w2vt"]),                  # W2^T v-half
                resident(prepped["b2"]),                    # b2
            ],
            out_specs=pl.BlockSpec((tm, H), lambda i: (i, 0)),
        ),
        compiler_params=pltpu.CompilerParams(
            dimension_semantics=("parallel",)),             # megacore sharding on v7x
    )(x_in, prepped["w1t"], prepped["b1"], prepped["cat"],
      prepped["w2xt"], prepped["w2vt"], prepped["b2"])

    return out if Bp == B else out[:B]


def b_forward_ref(x, params):
    """Pure-JAX f32 reference for correctness checking."""
    logits = x @ params["fc_w"].T + params["fc_b"]
    p = jax.nn.softmax(logits, axis=-1)
    v = p @ params["categories"]
    cat = jnp.concatenate([x, v], axis=-1)
    return cat @ params["fc2_w"].T + params["fc2_b"]


def init_params(key, hidden_size, n_categories):
    k1, k2, k3, k4, k5 = jax.random.split(key, 5)
    # Deterministic synthetic init (shapes match nn.Linear / nn.Parameter in B).
    bound1 = 1.0 / (hidden_size ** 0.5)
    bound2 = 1.0 / ((2 * hidden_size) ** 0.5)
    return {
        "fc_w": jax.random.uniform(k1, (n_categories, hidden_size),
                                   jnp.float32, -bound1, bound1),
        "fc_b": jax.random.uniform(k2, (n_categories,),
                                   jnp.float32, -bound1, bound1),
        "categories": 0.02 * jax.random.normal(k3, (n_categories, hidden_size),
                                               jnp.float32),
        "fc2_w": jax.random.uniform(k4, (hidden_size, 2 * hidden_size),
                                    jnp.float32, -bound2, bound2),
        "fc2_b": jax.random.uniform(k5, (hidden_size,),
                                    jnp.float32, -bound2, bound2),
    }


if __name__ == "__main__":
    hidden_size = 32
    n_categories = 16
    batch = 8

    key = jax.random.PRNGKey(0)
    pkey, xkey = jax.random.split(key)
    params = init_params(pkey, hidden_size, n_categories)
    x = jax.random.normal(xkey, (batch, hidden_size), jnp.float32)

    prepped = prepare_params(params)          # one-time weight prep (not per call)

    out = b_forward(x, prepped)
    out = jax.block_until_ready(out)

    ref = b_forward_ref(x, params)
    assert out.shape == (batch, hidden_size)
    max_err = float(jnp.max(jnp.abs(out - ref)))
    # bf16 operand precision (f32 accumulation) + approx reciprocal -> loosened tolerance
    assert jnp.allclose(out, ref, atol=2e-2, rtol=2e-2), \
        f"mismatch vs reference (max abs err {max_err})"

    print("KERNEL_OK")
</pallas_src>

<mosaic_0001>
module attributes {stable_mosaic.version = 11 : i64} {
  func.func @_b_kernel(%arg0: i32, %arg1: memref<8x32xf32, #tpu.memory_space<vmem>>, %arg2: memref<32x16xbf16, #tpu.memory_space<vmem>>, %arg3: memref<1x16xf32, #tpu.memory_space<vmem>>, %arg4: memref<16x32xbf16, #tpu.memory_space<vmem>>, %arg5: memref<32x32xbf16, #tpu.memory_space<vmem>>, %arg6: memref<32x32xbf16, #tpu.memory_space<vmem>>, %arg7: memref<1x32xf32, #tpu.memory_space<vmem>>, %arg8: memref<8x32xf32, #tpu.memory_space<vmem>>) attributes {dimension_semantics = [#tpu.dimension_semantics<parallel>], iteration_bounds = array<i64: 1>, scalar_prefetch = 0 : i64, scratch_operands = 0 : i64, tpu.core_type = #tpu.core_type<tc>, window_params = [{transform_indices = @transform_0, window_bounds = array<i64: 8, 32>}, {pipeline_mode = #tpu.pipeline_mode<synchronous>, transform_indices = @transform_1, window_bounds = array<i64: 32, 16>}, {pipeline_mode = #tpu.pipeline_mode<synchronous>, transform_indices = @transform_2, window_bounds = array<i64: 1, 16>}, {pipeline_mode = #tpu.pipeline_mode<synchronous>, transform_indices = @transform_3, window_bounds = array<i64: 16, 32>}, {pipeline_mode = #tpu.pipeline_mode<synchronous>, transform_indices = @transform_4, window_bounds = array<i64: 32, 32>}, {pipeline_mode = #tpu.pipeline_mode<synchronous>, transform_indices = @transform_5, window_bounds = array<i64: 32, 32>}, {pipeline_mode = #tpu.pipeline_mode<synchronous>, transform_indices = @transform_6, window_bounds = array<i64: 1, 32>}, {transform_indices = @transform_7, window_bounds = array<i64: 8, 32>}]} {
    %c0 = arith.constant 0 : index
    %c0_0 = arith.constant 0 : index
    %0 = vector.load %arg1[%c0, %c0_0] : memref<8x32xf32, #tpu.memory_space<vmem>>, vector<8x32xf32>
    %1 = arith.truncf %0 : vector<8x32xf32> to vector<8x32xbf16>
    %c0_1 = arith.constant 0 : index
    %c0_2 = arith.constant 0 : index
    %2 = vector.load %arg2[%c0_1, %c0_2] : memref<32x16xbf16, #tpu.memory_space<vmem>>, vector<32x16xbf16>
    %cst = arith.constant dense<0.000000e+00> : vector<8x16xf32>
    %3 = tpu.matmul %1, %2, %cst {dimension_numbers = #tpu.dot_dimension_numbers<[1], [0], [0], [1], [0, 0, 1, 1], [], []>} : vector<8x32xbf16>, vector<32x16xbf16>, vector<8x16xf32> -> vector<8x16xf32>
    %c0_3 = arith.constant 0 : index
    %c0_4 = arith.constant 0 : index
    %4 = vector.load %arg3[%c0_3, %c0_4] : memref<1x16xf32, #tpu.memory_space<vmem>>, vector<1x16xf32>
    %5 = vector.broadcast %4 : vector<1x16xf32> to vector<8x16xf32>
    %6 = arith.addf %3, %5 : vector<8x16xf32>
    %cst_5 = arith.constant dense<0xFF800000> : vector<8xf32>
    %7 = vector.multi_reduction <maximumf>, %6, %cst_5 [1] : vector<8x16xf32> to vector<8xf32>
    %8 = vector.shape_cast %7 : vector<8xf32> to vector<8x1xf32>
    %9 = vector.broadcast %8 : vector<8x1xf32> to vector<8x16xf32>
    %10 = arith.subf %6, %9 : vector<8x16xf32>
    %11 = math.exp %10 : vector<8x16xf32>
    %cst_6 = arith.constant dense<0.000000e+00> : vector<8xf32>
    %12 = vector.multi_reduction <add>, %11, %cst_6 [1] : vector<8x16xf32> to vector<8xf32>
    %13 = vector.shape_cast %12 : vector<8xf32> to vector<8x1xf32>
    %14 = arith.truncf %11 : vector<8x16xf32> to vector<8x16xbf16>
    %c0_7 = arith.constant 0 : index
    %c0_8 = arith.constant 0 : index
    %15 = vector.load %arg4[%c0_7, %c0_8] : memref<16x32xbf16, #tpu.memory_space<vmem>>, vector<16x32xbf16>
    %cst_9 = arith.constant dense<0.000000e+00> : vector<8x32xf32>
    %16 = tpu.matmul %14, %15, %cst_9 {dimension_numbers = #tpu.dot_dimension_numbers<[1], [0], [0], [1], [0, 0, 1, 1], [], []>} : vector<8x16xbf16>, vector<16x32xbf16>, vector<8x32xf32> -> vector<8x32xf32>
    %17 = tpu.reciprocal %13 {approx = true} : vector<8x1xf32> -> vector<8x1xf32>
    %18 = vector.broadcast %17 : vector<8x1xf32> to vector<8x32xf32>
    %19 = arith.mulf %16, %18 : vector<8x32xf32>
    %c0_10 = arith.constant 0 : index
    %c0_11 = arith.constant 0 : index
    %20 = vector.load %arg5[%c0_10, %c0_11] : memref<32x32xbf16, #tpu.memory_space<vmem>>, vector<32x32xbf16>
    %cst_12 = arith.constant dense<0.000000e+00> : vector<8x32xf32>
    %21 = tpu.matmul %1, %20, %cst_12 {dimension_numbers = #tpu.dot_dimension_numbers<[1], [0], [0], [1], [0, 0, 1, 1], [], []>} : vector<8x32xbf16>, vector<32x32xbf16>, vector<8x32xf32> -> vector<8x32xf32>
    %22 = arith.truncf %19 : vector<8x32xf32> to vector<8x32xbf16>
    %c0_13 = arith.constant 0 : index
    %c0_14 = arith.constant 0 : index
    %23 = vector.load %arg6[%c0_13, %c0_14] : memref<32x32xbf16, #tpu.memory_space<vmem>>, vector<32x32xbf16>
    %cst_15 = arith.constant dense<0.000000e+00> : vector<8x32xf32>
    %24 = tpu.matmul %22, %23, %cst_15 {dimension_numbers = #tpu.dot_dimension_numbers<[1], [0], [0], [1], [0, 0, 1, 1], [], []>} : vector<8x32xbf16>, vector<32x32xbf16>, vector<8x32xf32> -> vector<8x32xf32>
    %25 = arith.addf %21, %24 : vector<8x32xf32>
    %c0_16 = arith.constant 0 : index
    %c0_17 = arith.constant 0 : index
    %26 = vector.load %arg7[%c0_16, %c0_17] : memref<1x32xf32, #tpu.memory_space<vmem>>, vector<1x32xf32>
    %27 = vector.broadcast %26 : vector<1x32xf32> to vector<8x32xf32>
    %28 = arith.addf %25, %27 : vector<8x32xf32>
    %c0_18 = arith.constant 0 : index
    %c0_19 = arith.constant 0 : index
    %29 = vector.load %arg8[%c0_18, %c0_19] : memref<8x32xf32, #tpu.memory_space<vmem>>, vector<8x32xf32>
    tpu.vector_store %arg8[%c0_18, %c0_19], %28 {strides = array<i32>} : memref<8x32xf32, #tpu.memory_space<vmem>>, vector<8x32xf32>,
    return
  }
  func.func @transform_0(%arg0: i32) -> (i32, i32) {
    %c0_i32 = arith.constant 0 : i32
    %c0_i32_0 = arith.constant 0 : i32
    return %arg0, %c0_i32 : i32, i32
  }
  func.func @transform_1(%arg0: i32) -> (i32, i32) {
    %c0_i32 = arith.constant 0 : i32
    %c0_i32_0 = arith.constant 0 : i32
    %c0_i32_1 = arith.constant 0 : i32
    return %c0_i32, %c0_i32_0 : i32, i32
  }
  func.func @transform_2(%arg0: i32) -> (i32, i32) {
    %c0_i32 = arith.constant 0 : i32
    %c0_i32_0 = arith.constant 0 : i32
    %c0_i32_1 = arith.constant 0 : i32
    return %c0_i32, %c0_i32_0 : i32, i32
  }
  func.func @transform_3(%arg0: i32) -> (i32, i32) {
    %c0_i32 = arith.constant 0 : i32
    %c0_i32_0 = arith.constant 0 : i32
    %c0_i32_1 = arith.constant 0 : i32
    return %c0_i32, %c0_i32_0 : i32, i32
  }
  func.func @transform_4(%arg0: i32) -> (i32, i32) {
    %c0_i32 = arith.constant 0 : i32
    %c0_i32_0 = arith.constant 0 : i32
    %c0_i32_1 = arith.constant 0 : i32
    return %c0_i32, %c0_i32_0 : i32, i32
  }
  func.func @transform_5(%arg0: i32) -> (i32, i32) {
    %c0_i32 = arith.constant 0 : i32
    %c0_i32_0 = arith.constant 0 : i32
    %c0_i32_1 = arith.constant 0 : i32
    return %c0_i32, %c0_i32_0 : i32, i32
  }
  func.func @transform_6(%arg0: i32) -> (i32, i32) {
    %c0_i32 = arith.constant 0 : i32
    %c0_i32_0 = arith.constant 0 : i32
    %c0_i32_1 = arith.constant 0 : i32
    return %c0_i32, %c0_i32_0 : i32, i32
  }
  func.func @transform_7(%arg0: i32) -> (i32, i32) {
    %c0_i32 = arith.constant 0 : i32
    %c0_i32_0 = arith.constant 0 : i32
    return %arg0, %c0_i32 : i32, i32
  }
}

</mosaic_0001>

<bundles_post_ra>
// kernel: b_forward.1
= control target key start
LH: loop header
LB: loop body
LE: loop exit
PB: predicated region body
PF: predicated region fallthrough
CT: control target
= control target key end

     0   :  { %12 = vsyncpa [#allocation3], 0  ;;  %s597_s0 = inlined_call_operand.hbm [shape: f32[8,32], index: 0, kind: input, shape index: {}]   ;;  %s598_s1 = inlined_call_operand.vmem [shape: bf16[32,16], index: 1, kind: input, shape index: {}]   ;;  %s599_s2 = inlined_call_operand.vmem [shape: f32[1,16], index: 2, kind: input, shape index: {}]   ;;  %s600_s3 = inlined_call_operand.hbm [shape: bf16[16,32], index: 3, kind: input, shape index: {}]   ;;  %s601_s4 = inlined_call_operand.vmem [shape: bf16[32,32], index: 4, kind: input, shape index: {}]   ;;  %s602_s5 = inlined_call_operand.vmem [shape: bf16[32,32], index: 5, kind: input, shape index: {}]   ;;  %s603_s6 = inlined_call_operand.vmem [shape: f32[1,32], index: 6, kind: input, shape index: {}]   ;;  %s604_s7 = inlined_call_operand.hbm [shape: f32[8,32], index: 7, kind: output, shape index: {}]  }
   0x1   :  { %13 = vsyncpa [#allocation6], 0 }
   0x2   :  { %14 = vsyncpa [#allocation4], 0  ;;  %s472_s24 = smov [#allocation2]   ;;  %s473_s26 = smov [#allocation5]  }
   0x3   :  { %s21_s25 = sshll.u32 %s472_s24, 4  ;;  %s34_s27 = sshll.u32 %s473_s26, 4  ;;  %s22_s25 = int_to_ptr.vmem [resolvable:$true] %s21_s25  ;;  %s519_s27 = int_to_ptr.vmem [resolvable:$true] %s34_s27 }
   0x4   :  { %s400_s30 = scalar_lea.hbm %s597_s0, 128 }
   0x5   :  { %p401_p0 = scmp.ne.s32.totalorder %s597_s0, %s400_s30  ;;  %p404_p1 = scmp.lt.u32.totalorder %s400_s30, %s597_s0 }
   0x7   :  { %p406_p2 = pnand %p404_p1, %p401_p0 }
   0x9   :  { %409 = shalt.err (!%p406_p2)
}
   0xa   :  { %s410_s12 = scalar_lea.vmem %s22_s25, 128  ;;  %p415_p4 = scmp.lt.s32.totalorder %s22_s25, %s22_s25 }
   0xb   :  { %p411_p3 = scmp.ne.s32.totalorder %s22_s25, %s410_s12  ;;  %p416_p5 = scmp.lt.s32.totalorder %s410_s12, %s410_s12 }
   0xd   :  { %p417_p6 = por %p416_p5, %p415_p4 }
   0xf   :  { %p418_p7 = pnand %p417_p6, %p411_p3 }
  0x11   :  { %421 = shalt.err (!%p418_p7)
}
  0x12   :  { %24 = dma.hbm_to_vmem [thread:$0]  %s597_s0, 128, %s22_s25, [#allocation3]  }
  0x13   :  { %s422_s17 = scalar_lea.hbm %s600_s3, 128 }
  0x14   :  { %p423_p8 = scmp.ne.s32.totalorder %s600_s3, %s422_s17  ;;  %p426_p9 = scmp.lt.u32.totalorder %s422_s17, %s600_s3 }
  0x16   :  { %p428_p10 = pnand %p426_p9, %p423_p8 }
  0x18   :  { %431 = shalt.err (!%p428_p10)
}
  0x19   :  { %s432_s22 = scalar_lea.vmem %s519_s27, 128  ;;  %p437_p12 = scmp.lt.s32.totalorder %s519_s27, %s519_s27 }
  0x1a   :  { %p433_p11 = scmp.ne.s32.totalorder %s519_s27, %s432_s22  ;;  %p438_p13 = scmp.lt.s32.totalorder %s432_s22, %s432_s22 }
  0x1c   :  { %p439_p0 = por %p438_p13, %p437_p12 }
  0x1e   :  { %p440_p1 = pnand %p439_p0, %p433_p11 }
  0x20   :  { %443 = shalt.err (!%p440_p1)
}
  0x21   :  { %s474_s0 = smov 64   ;;  %s475_s23 = smov 4  }
  0x22   :  { %40 = dma.hbm_to_vmem [thread:$0]  %s600_s3, 128, %s519_s27, [#allocation6], %s474_s0, %s474_s0, %s475_s23  }
  0x23   :  { %466 = dma.done.wait [#allocation3], 128  }
  0x24   :  { %467 = vsyncadd [#allocation3], 4294967168 }
  0x25   :  { %468 = dma.done.wait [#allocation6], 128  }
  0x26   :  { %469 = vsyncadd [#allocation6], 4294967168  ;;  %v476_v0 = vmov 0.0   ;;  %vm477_vm0 = vmmov 0   ;;  %v389_v1 = vld [vmem:[%s598_s1] sm:$0xff]   ;;  %v390_v2 = vld [vmem:[%s598_s1 + $0x8] sm:$0xff]  }
  0x27   :  { %352 = vmatprep.subr.bf16.mxu0 %v476_v0  ;;  %356 = vmatprep.mubr.msk.bf16.mxu0 %vm477_vm0, %v476_v0  ;;  %v54_v3 = vld [vmem:[#allocation2] sm:$0xff]  ;;  %vm79_vm1 = vcmask 261120   ;;  %vm123_vm2 = vcmask 130048   ;;  %v391_v12 = vld [vmem:[#allocation5] sm:$0xff]  }
  0x28   :  { %360 = vmatprep.subr.bf16.mxu1 %v476_v0  ;;  %362 = vmatprep.mubr.msk.bf16.mxu1 %vm477_vm0, %v476_v0  ;;  %v55_v4 = vpack.c.bf16 %v54_v3, %v54_v3  ;;  %v328_v5 = vld [vmem:[%s599_s2] ss:$0 sm:$0xff]  ;;  %v394_v21 = vld [vmem:[%s601_s4 + $0x8] sm:$0xff]  }
  0x29   :  { %353 = vmatpush3.bf16.msra.mxu0 %v389_v1  ;;  %361 = vmatpush3.bf16.msra.mxu1 %v391_v12  ;;  %v392_v19 = vld [vmem:[%s601_s4] sm:$0xff]   ;;  %v395_v22 = vld [vmem:[%s602_s5 + $0x8] sm:$0xff]  }
  0x2a   :  { %354 = vmatprep.subr.bf16.mxu0 %v476_v0  ;;  %366 = vmatprep.subr.bf16.mxu1 %v476_v0  ;;  %v393_v20 = vld [vmem:[%s602_s5] sm:$0xff]   ;;  %s478_s5 = smov [#allocation7]  }
  0x2b   :  { %v340_v36 = vld [vmem:[%s603_s6] ss:$0 sm:$0xff]  ;;  %s318_s15 = sshll.u32 %s478_s5, 4  ;;  %s319_s15 = int_to_ptr.vmem [resolvable:$true] %s318_s15 }
  0x2c   :  { %s444_s16 = scalar_lea.vmem %s319_s15, 128  ;;  %p449_p3 = scmp.lt.s32.totalorder %s319_s15, %s319_s15 }
  0x2d   :  { %355 = vmatpush3.bf16.msra.mxu0 %v390_v2  ;;  %p445_p2 = scmp.ne.s32.totalorder %s319_s15, %s444_s16  ;;  %p450_p4 = scmp.lt.s32.totalorder %s444_s16, %s444_s16 }
  0x2e   :  { %374 = vmatprep.subr.bf16.mxu0 %v476_v0 }
  0x2f   :  { %p451_p5 = por %p450_p4, %p449_p3 }
  0x30   :  { %357 = vmatmul.mubr.msk.bf16.vlgmr.msra.gmra.mrb[0].mxu0 %vm79_vm1, %v55_v4 }
  0x31   :  { %378 = vmatprep.mubr.msk.bf16.mxu0 %vm477_vm0, %v476_v0  ;;  %375 = vmatpush3.bf16.msra.mxu0 %v392_v19  ;;  %p452_p6 = pnand %p451_p5, %p445_p2 }
  0x32   :  { %376 = vmatprep.subr.bf16.mxu0 %v476_v0 }
  0x35   :  { %377 = vmatpush3.bf16.msra.mxu0 %v394_v21 }
  0x38   :  { %379 = vmatmul.mubr.msk.bf16.vlgmr.msra.gmra.mrb[4].mxu0 %vm79_vm1, %v55_v4 }
 0x103   :  { %v117_v6 = vpop.f32.mrb[0].mxu0 }
 0x104   :  { %v118_v7 = vadd.f32 %v328_v5, %v117_v6  ;;  %v358_v8 = vpop.f32.mrb[1].mxu0 }
 0x105   :  { %v120_v9 = vpop.f32.mrb[2].mxu0 }
 0x106   :  { %v359_v10 = vpop.f32.mrb[3].mxu0  ;;  %v124_v11 = vsel %vm123_vm2, %v118_v7, -inf }
 0x107   :  { %125 = vmax.xlane.f32.xlu0 %v124_v11 }
 0x10b   :  { %v297_v31 = vpop.f32.mrb[4].mxu0 }
 0x10c   :  { %v380_v32 = vpop.f32.mrb[5].mxu0 }
 0x10d   :  { %v300_v33 = vpop.f32.mrb[6].mxu0 }
 0x10e   :  { %v381_v34 = vpop.f32.mrb[7].mxu0 }
 0x194   :  { %v126_v13 = vpop.xlane.xlu0 %125 }
 0x195   :  { %v127_v14 = vsub.f32 %v118_v7, %v126_v13 }
 0x197   :  { %v128_v15 = vmul.f32 1.442695, %v127_v14 }
 0x199   :  { %396 = vpow2.f32 %v128_v15 }
 0x1a3   :  { %v397_v16 = vpop.eup %396 }
 0x1a4   :  { %v130_v17 = vsel %vm123_vm2, %v397_v16, 0.0  ;;  %v133_v18 = vpack.c.bf16 %v397_v16, %v397_v16 }
 0x1a5   :  { %131 = vadd.xlane.f32.xlu0 %v130_v17 }
 0x1a6   :  { %363 = vmatmul.mubr.msk.bf16.vlgmr.msra.gmra.mrb[0].mxu1 %vm123_vm2, %v133_v18 }
 0x1a7   :  { %370 = vmatprep.mubr.msk.bf16.mxu1 %vm477_vm0, %v476_v0  ;;  %367 = vmatpush3.bf16.msra.mxu1 %v393_v20 }
 0x1a8   :  { %368 = vmatprep.subr.bf16.mxu1 %v476_v0 }
 0x1ab   :  { %369 = vmatpush3.bf16.msra.mxu1 %v395_v22 }
 0x232   :  { %v132_v23 = vpop.xlane.xlu0 %131 }
 0x233   :  { %398 = vrcp.f32 %v132_v23 }
 0x23d   :  { %v399_v24 = vpop.eup %398 }
 0x279   :  { %v179_v25 = vpop.f32.mrb[0].mxu1 }
 0x27a   :  { %v186_v26 = vmul.f32 %v399_v24, %v179_v25  ;;  %v364_v27 = vpop.f32.mrb[1].mxu1 }
 0x27b   :  { %v182_v28 = vpop.f32.mrb[2].mxu1 }
 0x27c   :  { %v191_v29 = vpack.c.bf16 %v186_v26, %v186_v26  ;;  %v365_v30 = vpop.f32.mrb[3].mxu1 }
 0x27e   :  { %371 = vmatmul.mubr.msk.bf16.vlgmr.msra.gmra.mrb[4].mxu1 %vm79_vm1, %v191_v29 }
 0x351   :  { %v245_v35 = vpop.f32.mrb[4].mxu1 }
 0x352   :  { %v298_v37 = vadd.f32 %v297_v31, %v245_v35  ;;  %v372_v38 = vpop.f32.mrb[5].mxu1 }
 0x353   :  { %v248_v39 = vpop.f32.mrb[6].mxu1 }
 0x354   :  { %v310_v40 = vadd.f32 %v340_v36, %v298_v37  ;;  %v373_v41 = vpop.f32.mrb[7].mxu1 }
 0x356   :  { %311 = vst.msk [vmem:[#allocation7] sm:$0xff] %vm79_vm1, %v310_v40 }
 0x357   :  { %455 = shalt.err (!%p452_p6)
}
 0x358   :  { %s456_s6 = scalar_lea.hbm %s604_s7, 128 }
 0x359   :  { %p457_p7 = scmp.ne.s32.totalorder %s604_s7, %s456_s6  ;;  %p460_p8 = scmp.lt.u32.totalorder %s456_s6, %s604_s7 }
 0x35b   :  { %p462_p9 = pnand %p460_p8, %p457_p7 }
 0x35d   :  { %465 = shalt.err (!%p462_p9)
}
 0x35e   :  { %321 = dma.vmem_to_hbm [thread:$0]  %s319_s15, 128, %s604_s7, [#allocation4]  }
 0x35f   :  { %470 = dma.done.wait [#allocation4], 128  }
 0x360   :  { %471 = vsyncadd [#allocation4], 4294967168 }
 0x361   :  { %325 = vsyncpa [#allocation3], 1 }
 0x362   :  { %326 = vsyncpa [#allocation6], 1 }
 0x363   :  { %327 = vsyncpa [#allocation4], 1 }

</bundles_post_ra>
